<compile_context>
chip_gen: v7x
topology: tpu7x:2x2x1
jax: 0.10.0
libtpu: 0.0.40
codegen_flags: <defaults>
</compile_context>

<pallas_src>
import functools

import jax
import jax.numpy as jnp
from jax.experimental import pallas as pl
from jax.experimental.pallas import tpu as pltpu

_LANE = 128


def _sublane(itemsize):
    # Sublane packing: 8 for 32-bit, 16 for 16-bit, 32 for 8-bit dtypes.
    return 8 * max(1, 4 // max(1, itemsize))


def _round_up(v, m):
    return -(-v // m) * m


def _vmem_budget():
    """(per_input_buffer_budget_bytes, vmem_limit_cap_bytes) — generation aware."""
    cap_bytes = None
    try:
        info = pltpu.get_tpu_info()
        cap_bytes = getattr(info, "vmem_capacity_bytes", None)
    except Exception:
        cap_bytes = None
    if cap_bytes is not None and cap_bytes >= (100 << 20):
        # v5e / v6e: 128 MiB physical VMEM -> bigger tiles amortize step overhead.
        return 16 << 20, 56 << 20
    # v7x (64 MiB physical VMEM) or unknown: stay conservative.
    return 8 << 20, 36 << 20


def _select_blocks(R, L, itemsize, budget):
    """Pick (block_r, block_l) for the folded (R, L) view."""
    sub = _sublane(itemsize)
    row_bytes = _round_up(L, _LANE) * itemsize
    min_rows = min(R, sub)

    if min_rows * row_bytes <= budget:
        # Full-length rows fit: take all of L, grow the row block to the budget.
        block_l = L
        max_rows = max(sub, (budget // row_bytes) // sub * sub)
        block_r = min(R, max_rows)
        if R >= 2 * sub and block_r >= R:
            # Keep >= 2 blocks on the parallel axis so both v7x TCs get work.
            block_r = max(sub, (R // 2) // sub * sub)
    else:
        # Rows are long: minimal row group, tile L toward the budget.
        block_r = min_rows
        max_tl = max(_LANE, (budget // (block_r * itemsize)) // _LANE * _LANE)
        if L <= max_tl:
            block_l = L
        else:
            # Prefer a multiple of 128 that divides L (no ragged tail) ...
            block_l = 0
            tl = max_tl
            while tl >= _LANE:
                if L % tl == 0:
                    block_l = tl
                    break
                tl -= _LANE
            # ... unless it is much smaller than the budget allows.
            if block_l == 0 or block_l < max_tl // 2:
                block_l = max_tl  # ragged last tile, masked in-kernel
    return block_r, block_l


def _make_kernel(L, block_l, ragged_l):
    inv_l = 1.0 / float(L)

    def kernel(x_ref, o_ref, max_acc, sum_acc):
        l = pl.program_id(1)
        n_l = pl.num_programs(1)

        @pl.when(l == 0)
        def _init():
            max_acc[...] = jnp.full_like(max_acc, -jnp.inf)
            sum_acc[...] = jnp.zeros_like(sum_acc)

        def _accumulate(x_for_max, x_for_sum):
            tile_max = jnp.max(x_for_max, axis=-1, keepdims=True)  # (br, 1), in dtype
            tile_sum = jnp.sum(x_for_sum, axis=-1, keepdims=True, dtype=jnp.float32)
            max_acc[...] = jnp.maximum(max_acc[...], tile_max.astype(jnp.float32))
            sum_acc[...] = sum_acc[...] + tile_sum

        if ragged_l:
            # Fast path: every tile except the last is fully in-bounds -> no mask.
            @pl.when(l < n_l - 1)
            def _fast():
                x = x_ref[...]
                _accumulate(x, x)

            # Masked path: only the final L tile pays for iota + selects.
            @pl.when(l == n_l - 1)
            def _last_masked():
                x = x_ref[...]
                idx = jax.lax.broadcasted_iota(jnp.int32, x.shape, 1)
                valid = (l * block_l + idx) < L
                neg_inf = jnp.asarray(-jnp.inf, dtype=x.dtype)
                zero = jnp.asarray(0.0, dtype=x.dtype)
                _accumulate(jnp.where(valid, x, neg_inf), jnp.where(valid, x, zero))
        else:
            x = x_ref[...]
            _accumulate(x, x)

        @pl.when(l == n_l - 1)
        def _finalize():
            o_ref[:, 0:1] = max_acc[...].astype(o_ref.dtype)
            o_ref[:, 1:2] = (sum_acc[...] * inv_l).astype(o_ref.dtype)

    return kernel


@functools.partial(jax.jit, static_argnames=("block_r", "block_l", "vmem_limit_bytes"))
def adaptive_concat_pool1d(x, *, block_r=None, block_l=None, vmem_limit_bytes=None):
    """x: (N, C, L) float -> (N, 2*C, 1). Matches AdaptiveConcatPool1d(sz=None)."""
    if x.ndim != 3:
        raise ValueError(f"expected (N, C, L), got {x.shape}")
    if not jnp.issubdtype(x.dtype, jnp.floating):
        raise ValueError("adaptive_concat_pool1d supports floating dtypes only "
                         "(-inf sentinel used for the max accumulator)")

    N, C, L = x.shape
    R = N * C
    itemsize = jnp.dtype(x.dtype).itemsize
    sub = _sublane(itemsize)

    per_buf_budget, vmem_cap = _vmem_budget()
    auto_r, auto_l = _select_blocks(R, L, itemsize, per_buf_budget)
    block_r = auto_r if block_r is None else int(block_r)
    block_l = auto_l if block_l is None else int(block_l)

    # Validate (8, 128)-style layout constraints up front instead of at lowering.
    if block_r != R and (block_r <= 0 or block_r % sub != 0):
        raise ValueError(f"block_r must equal N*C ({R}) or be a positive multiple of {sub}")
    if block_l != L and (block_l <= 0 or block_l % _LANE != 0):
        raise ValueError(f"block_l must equal L ({L}) or be a positive multiple of {_LANE}")
    block_r = min(block_r, R)
    block_l = min(block_l, _round_up(L, _LANE))

    ragged_l = (L % block_l) != 0
    grid = (pl.cdiv(R, block_r), pl.cdiv(L, block_l))

    if vmem_limit_bytes is None:
        br_pad = _round_up(block_r, sub)
        bl_pad = _round_up(block_l, _LANE)
        in_block = br_pad * bl_pad * itemsize
        out_block = br_pad * _LANE * itemsize
        scratch = 2 * br_pad * _LANE * 4
        needed = 2 * in_block + 2 * out_block + scratch + (2 << 20)
        vmem_limit_bytes = int(min(max(needed, 16 << 20), vmem_cap))

    kernel = _make_kernel(L, block_l, ragged_l)

    x2d = x.reshape(R, L)  # free: merges contiguous leading dims

    out = pl.pallas_call(
        kernel,
        out_shape=jax.ShapeDtypeStruct((R, 2), x.dtype),
        grid=grid,
        in_specs=[pl.BlockSpec((block_r, block_l), lambda r, l: (r, l))],
        # Same output block across the L axis -> accumulator-style residency.
        out_specs=pl.BlockSpec((block_r, 2), lambda r, l: (r, 0)),
        scratch_shapes=[
            pltpu.VMEM((block_r, 1), jnp.float32),  # running max
            pltpu.VMEM((block_r, 1), jnp.float32),  # running f32 sum
        ],
        compiler_params=pltpu.CompilerParams(
            dimension_semantics=("parallel", "arbitrary"),
            vmem_limit_bytes=vmem_limit_bytes,
        ),
    )(x2d)

    # Tiny layout plumbing outside the kernel: (R, 2) -> (N, 2*C, 1),
    # first C channels = max, next C channels = mean.
    return out.reshape(N, C, 2).transpose(0, 2, 1).reshape(N, 2 * C, 1)


def _reference(x):
    return jnp.concatenate(
        [jnp.max(x, axis=-1, keepdims=True), jnp.mean(x, axis=-1, keepdims=True)],
        axis=1,
    )


# TODO(synk): `attrib()` / `cd_adaptiveconcatpool` (contextual-decomposition
# attribution) is not part of the forward pass and is not implemented here.

if __name__ == "__main__":
    key = jax.random.PRNGKey(0)

    # 1) Small case, single block, full-L path.
    N, C, L = 2, 4, 16
    x = jax.random.normal(key, (N, C, L), dtype=jnp.float32)
    out = adaptive_concat_pool1d(x)
    jax.block_until_ready(out)
    ref = _reference(x)
    assert out.shape == (N, 2 * C, 1), out.shape
    assert jnp.allclose(out, ref, atol=1e-5), "mismatch vs reference (small case)"

    # 2) Tiled L with a ragged (masked) last tile + multiple row blocks.
    #    Mostly-negative inputs so the -inf padding path for max is really tested.
    key2 = jax.random.fold_in(key, 1)
    N2, C2, L2 = 2, 8, 320
    x2 = jax.random.normal(key2, (N2, C2, L2), dtype=jnp.float32) - 3.0
    out2 = adaptive_concat_pool1d(x2, block_l=128)
    jax.block_until_ready(out2)
    ref2 = _reference(x2)
    assert out2.shape == (N2, 2 * C2, 1), out2.shape
    assert jnp.allclose(out2, ref2, atol=1e-5), "mismatch vs reference (tiled L case)"

    # 3) Odd channel count (row folding), ragged row blocks AND ragged L tail.
    key3 = jax.random.fold_in(key, 2)
    N3, C3, L3 = 3, 7, 200
    x3 = jax.random.normal(key3, (N3, C3, L3), dtype=jnp.float32) - 1.0
    out3 = adaptive_concat_pool1d(x3, block_r=8, block_l=128)
    jax.block_until_ready(out3)
    ref3 = _reference(x3)
    assert out3.shape == (N3, 2 * C3, 1), out3.shape
    assert jnp.allclose(out3, ref3, atol=1e-5), "mismatch vs reference (ragged rows case)"

    print("KERNEL_OK")
</pallas_src>

<mosaic_0001>
module attributes {stable_mosaic.version = 11 : i64} {
  func.func @kernel(%arg0: i32, %arg1: i32, %arg2: memref<8x16xf32, #tpu.memory_space<vmem>>, %arg3: memref<8x2xf32, #tpu.memory_space<vmem>>, %arg4: memref<8x1xf32, #tpu.memory_space<vmem>>, %arg5: memref<8x1xf32, #tpu.memory_space<vmem>>) attributes {dimension_semantics = [#tpu.dimension_semantics<parallel>, #tpu.dimension_semantics<arbitrary>], iteration_bounds = array<i64: 1, 1>, scalar_prefetch = 0 : i64, scratch_operands = 2 : i64, tpu.core_type = #tpu.core_type<tc>, window_params = [{transform_indices = @transform_0, window_bounds = array<i64: 8, 16>}, {transform_indices = @transform_1, window_bounds = array<i64: 8, 2>}]} {
    %c0_i32 = arith.constant 0 : i32
    %0 = arith.cmpi eq, %arg1, %c0_i32 : i32
    %1 = arith.extui %0 : i1 to i32
    %c0_i32_0 = arith.constant 0 : i32
    %2 = arith.cmpi ne, %1, %c0_i32_0 : i32
    scf.if %2 {
      %cst_13 = arith.constant 0xFF800000 : f32
      %17 = vector.broadcast %cst_13 : f32 to vector<8x1xf32>
      %c0_14 = arith.constant 0 : index
      %c0_15 = arith.constant 0 : index
      %18 = vector.load %arg4[%c0_14, %c0_15] : memref<8x1xf32, #tpu.memory_space<vmem>>, vector<8x1xf32>
      tpu.vector_store %arg4[%c0_14, %c0_15], %17 {strides = array<i32>} : memref<8x1xf32, #tpu.memory_space<vmem>>, vector<8x1xf32>,
      %cst_16 = arith.constant 0.000000e+00 : f32
      %19 = vector.broadcast %cst_16 : f32 to vector<8x1xf32>
      %c0_17 = arith.constant 0 : index
      %c0_18 = arith.constant 0 : index
      %20 = vector.load %arg5[%c0_17, %c0_18] : memref<8x1xf32, #tpu.memory_space<vmem>>, vector<8x1xf32>
      tpu.vector_store %arg5[%c0_17, %c0_18], %19 {strides = array<i32>} : memref<8x1xf32, #tpu.memory_space<vmem>>, vector<8x1xf32>,
    } else {
    }
    %c0 = arith.constant 0 : index
    %c0_1 = arith.constant 0 : index
    %3 = vector.load %arg2[%c0, %c0_1] : memref<8x16xf32, #tpu.memory_space<vmem>>, vector<8x16xf32>
    %cst = arith.constant dense<0xFF800000> : vector<8xf32>
    %4 = vector.multi_reduction <maximumf>, %3, %cst [1] : vector<8x16xf32> to vector<8xf32>
    %5 = vector.shape_cast %4 : vector<8xf32> to vector<8x1xf32>
    %cst_2 = arith.constant dense<0.000000e+00> : vector<8xf32>
    %6 = vector.multi_reduction <add>, %3, %cst_2 [1] : vector<8x16xf32> to vector<8xf32>
    %7 = vector.shape_cast %6 : vector<8xf32> to vector<8x1xf32>
    %c0_3 = arith.constant 0 : index
    %c0_4 = arith.constant 0 : index
    %8 = vector.load %arg4[%c0_3, %c0_4] : memref<8x1xf32, #tpu.memory_space<vmem>>, vector<8x1xf32>
    %9 = arith.maximumf %8, %5 : vector<8x1xf32>
    %c0_5 = arith.constant 0 : index
    %c0_6 = arith.constant 0 : index
    %10 = vector.load %arg4[%c0_5, %c0_6] : memref<8x1xf32, #tpu.memory_space<vmem>>, vector<8x1xf32>
    tpu.vector_store %arg4[%c0_5, %c0_6], %9 {strides = array<i32>} : memref<8x1xf32, #tpu.memory_space<vmem>>, vector<8x1xf32>,
    %c0_7 = arith.constant 0 : index
    %c0_8 = arith.constant 0 : index
    %11 = vector.load %arg5[%c0_7, %c0_8] : memref<8x1xf32, #tpu.memory_space<vmem>>, vector<8x1xf32>
    %12 = arith.addf %11, %7 : vector<8x1xf32>
    %c0_9 = arith.constant 0 : index
    %c0_10 = arith.constant 0 : index
    %13 = vector.load %arg5[%c0_9, %c0_10] : memref<8x1xf32, #tpu.memory_space<vmem>>, vector<8x1xf32>
    tpu.vector_store %arg5[%c0_9, %c0_10], %12 {strides = array<i32>} : memref<8x1xf32, #tpu.memory_space<vmem>>, vector<8x1xf32>,
    %c0_i32_11 = arith.constant 0 : i32
    %14 = arith.cmpi eq, %arg1, %c0_i32_11 : i32
    %15 = arith.extui %14 : i1 to i32
    %c0_i32_12 = arith.constant 0 : i32
    %16 = arith.cmpi ne, %15, %c0_i32_12 : i32
    scf.if %16 {
      %c0_13 = arith.constant 0 : index
      %c0_14 = arith.constant 0 : index
      %17 = vector.load %arg4[%c0_13, %c0_14] : memref<8x1xf32, #tpu.memory_space<vmem>>, vector<8x1xf32>
      %c0_15 = arith.constant 0 : index
      %c0_16 = arith.constant 0 : index
      %18 = vector.load %arg3[%c0_15, %c0_16] : memref<8x2xf32, #tpu.memory_space<vmem>>, vector<8x1xf32>
      tpu.vector_store %arg3[%c0_15, %c0_16], %17 {strides = array<i32>} : memref<8x2xf32, #tpu.memory_space<vmem>>, vector<8x1xf32>,
      %c0_17 = arith.constant 0 : index
      %c0_18 = arith.constant 0 : index
      %19 = vector.load %arg5[%c0_17, %c0_18] : memref<8x1xf32, #tpu.memory_space<vmem>>, vector<8x1xf32>
      %cst_19 = arith.constant 6.250000e-02 : f32
      %20 = vector.broadcast %cst_19 : f32 to vector<8x1xf32>
      %21 = arith.mulf %19, %20 : vector<8x1xf32>
      %c0_20 = arith.constant 0 : index
      %c1 = arith.constant 1 : index
      %22 = vector.load %arg3[%c0_20, %c1] : memref<8x2xf32, #tpu.memory_space<vmem>>, vector<8x1xf32>
      tpu.vector_store %arg3[%c0_20, %c1], %21 {strides = array<i32>} : memref<8x2xf32, #tpu.memory_space<vmem>>, vector<8x1xf32>,
    } else {
    }
    return
  }
  func.func @transform_0(%arg0: i32, %arg1: i32) -> (i32, i32) {
    %c0_i32 = arith.constant 0 : i32
    return %arg0, %arg1 : i32, i32
  }
  func.func @transform_1(%arg0: i32, %arg1: i32) -> (i32, i32) {
    %c0_i32 = arith.constant 0 : i32
    %c0_i32_0 = arith.constant 0 : i32
    return %arg0, %c0_i32 : i32, i32
  }
}

</mosaic_0001>

<bundles_post_ra>
// kernel: adaptive_concat_pool1d.1
= control target key start
LH: loop header
LB: loop body
LE: loop exit
PB: predicated region body
PF: predicated region fallthrough
CT: control target
= control target key end

     0   :  { %6 = vsyncpa [#allocation5], 0  ;;  %s88_s6 = smov [#allocation4]   ;;  %s125_s0 = inlined_call_operand.hbm [shape: f32[8,16], index: 0, kind: input, shape index: {}]   ;;  %s126_s1 = inlined_call_operand.vmem [shape: f32[8,2], index: 1, kind: output, shape index: {}]  }
   0x1   :  { %s13_s7 = sshll.u32 %s88_s6, 4  ;;  %s64_s10 = scalar_lea.hbm %s125_s0, 128  ;;  %s14_s7 = int_to_ptr.vmem [resolvable:$true] %s13_s7 }
   0x2   :  { %p65_p0 = scmp.ne.s32.totalorder %s125_s0, %s64_s10  ;;  %p68_p1 = scmp.lt.u32.totalorder %s64_s10, %s125_s0 }
   0x4   :  { %p70_p2 = pnand %p68_p1, %p65_p0 }
   0x6   :  { %73 = shalt.err (!%p70_p2)
}
   0x7   :  { %s74_s15 = scalar_lea.vmem %s14_s7, 128  ;;  %p79_p4 = scmp.lt.s32.totalorder %s14_s7, %s14_s7 }
   0x8   :  { %p75_p3 = scmp.ne.s32.totalorder %s14_s7, %s74_s15  ;;  %p80_p5 = scmp.lt.s32.totalorder %s74_s15, %s74_s15 }
   0xa   :  { %p81_p6 = por %p80_p5, %p79_p4 }
   0xc   :  { %p82_p7 = pnand %p81_p6, %p75_p3 }
   0xe   :  { %85 = shalt.err (!%p82_p7)
}
   0xf   :  { %16 = dma.hbm_to_vmem [thread:$0]  %s125_s0, 128, %s14_s7, [#allocation5]  }
  0x10   :  { %86 = dma.done.wait [#allocation5], 128  }
  0x11   :  { %87 = vsyncadd [#allocation5], 4294967168  ;;  %vm24_vm0 = vcmask 7168   ;;  %v89_v0 = vmov 0.0   ;;  %vm28_vm1 = vcmask 130048   ;;  %v27_v1 = vld [vmem:[#allocation4] sm:$0xff] }
  0x12   :  { %26 = vst.msk [vmem:[#allocation3] sm:$0xff] %vm24_vm0, %v89_v0  ;;  %v32_v2 = vsel %vm28_vm1, %v27_v1, 0.0  ;;  %v29_v3 = vsel %vm28_vm1, %v27_v1, -inf  ;;  %v90_v4 = vmov -inf   ;;  %s91_s0 = smov 1   ;;  %vm53_vm2 = vcmask 15368  }
  0x13   :  { %33 = vadd.xlane.f32.xlu0 %v32_v2  ;;  %25 = vst.msk [vmem:[#allocation2] sm:$0xff] %vm24_vm0, %v90_v4 }
  0x17   :  { %30 = vmax.xlane.f32.xlu0 %v29_v3 }
  0x19   :  { %v39_v5 = vld [vmem:[#allocation3] sm:$0xff] }
  0x1a   :  { %v35_v8 = vld [vmem:[#allocation2] sm:$0xff] }
  0xa0   :  { %v34_v6 = vpop.xlane.xlu0 %33 }
  0xa1   :  { %v40_v7 = vadd.f32 %v39_v5, %v34_v6 }
  0xa3   :  { %41 = vst.msk [vmem:[#allocation3] sm:$0xff] %vm24_vm0, %v40_v7 }
  0xa4   :  { %v31_v9 = vpop.xlane.xlu0 %30 }
  0xa5   :  { %v36_v10 = vmax.f32 %v35_v8, %v31_v9 }
  0xa7   :  { %38 = vst.msk [vmem:[#allocation2] sm:$0xff] %vm24_vm0, %v36_v10 }
  0xaa   :  { %v47_v11 = vld [vmem:[#allocation3] sm:$0xff] }
  0xab   :  { %v48_v12 = vmul.f32 0.0625, %v47_v11 }
  0xad   :  { %50 = vrot.lane.b32.xlu1 %v48_v12, %s91_s0 }
  0xae   :  { %v45_v13 = vld [vmem:[#allocation2] sm:$0xff] }
  0xaf   :  { %46 = vst.msk [vmem:[%s126_s1] sm:$0xff] %vm24_vm0, %v45_v13 }
 0x11f   :  { %v51_v14 = vpop.permute.xlu1 %50 }
 0x120   :  { %54 = vst.msk [vmem:[%s126_s1] sm:$0xff] %vm53_vm2, %v51_v14 }
 0x121   :  { %59 = vsyncpa [#allocation5], 1 }

</bundles_post_ra>
